<compile_context>
chip_gen: v7x
topology: tpu7x:2x2x1
jax: 0.10.0
libtpu: 0.0.40
codegen_flags: <defaults>
</compile_context>

<pallas_src>
import jax
import jax.numpy as jnp
from jax import lax
from jax.experimental import pallas as pl
from jax.experimental.pallas import tpu as pltpu

N_BASES = 4          # RNA alphabet: A, C, G, U
LANE = 128           # TPU lane width


def _round_up(x, m):
    return (x + m - 1) // m * m


# ----------------------------------------------------------------------------
# Pallas kernel: fused featurize (one-hot) + Linear -> ReLU -> Linear
# ----------------------------------------------------------------------------
def _fused_kernel(x_ref, w1r_ref, b1_ref, w2_ref, b2_ref, o_ref):
    # x_ref  : (Bt, L)      int32   raw base ids in [0, N_BASES)
    # w1r_ref: (4, L, Hp)   bf16    w1r[a, l, :] == W1[l*4 + a, :]
    # b1_ref : (1, Hp)      f32
    # w2_ref : (Hp, Dp)     bf16
    # b2_ref : (1, Dp)      f32
    # o_ref  : (Bt, Dp)     f32
    x = x_ref[...]
    bt = x.shape[0]
    hp = w1r_ref.shape[2]

    # one_hot(x) @ W1  ==  sum_a (x == a) @ W1r[a]   (no gather, no reshape)
    h = jnp.zeros((bt, hp), jnp.float32)
    for a in range(N_BASES):                       # static unroll (4 iters)
        mask = (x == a).astype(jnp.bfloat16)       # (Bt, L), exact 0/1
        h = h + jnp.dot(mask, w1r_ref[a],
                        preferred_element_type=jnp.float32)

    h = jnp.maximum(h + b1_ref[...], 0.0)          # bias + ReLU in f32 (VPU)
    o = jnp.dot(h.astype(jnp.bfloat16), w2_ref[...],
                preferred_element_type=jnp.float32) + b2_ref[...]
    o_ref[...] = o.astype(o_ref.dtype)


def state_mlp_pallas(states, w1r, b1, w2, b2, *, batch_tile=None):
    """states: (B, L) int32. Returns (B, Dp) f32 (padded output cols included)."""
    B, L = states.shape
    n_bases, _, Hp = w1r.shape
    Dp = w2.shape[1]

    if batch_tile is None:
        batch_tile = min(256, _round_up(B, 8))
    batch_tile = _round_up(batch_tile, 8)
    Bp = _round_up(B, batch_tile)
    if Bp != B:
        # Ragged-tail handling: pad batch with valid (zero) base ids, slice later.
        states = jnp.pad(states, ((0, Bp - B), (0, 0)))

    grid = (Bp // batch_tile,)
    cost = pl.CostEstimate(
        flops=2 * Bp * (n_bases * L * Hp + Hp * Dp),
        transcendentals=0,
        bytes_accessed=(states.size * 4 + w1r.size * 2 + w2.size * 2
                        + b1.size * 4 + b2.size * 4 + Bp * Dp * 4),
    )

    out = pl.pallas_call(
        _fused_kernel,
        out_shape=jax.ShapeDtypeStruct((Bp, Dp), jnp.float32),
        grid_spec=pltpu.PrefetchScalarGridSpec(
            num_scalar_prefetch=0,
            grid=grid,
            in_specs=[
                pl.BlockSpec((batch_tile, L), lambda i: (i, 0)),      # raw int states
                pl.BlockSpec((n_bases, L, Hp), lambda i: (0, 0, 0)),  # W1 (reorganized, resident)
                pl.BlockSpec((1, Hp), lambda i: (0, 0)),              # b1
                pl.BlockSpec((Hp, Dp), lambda i: (0, 0)),             # W2 (resident)
                pl.BlockSpec((1, Dp), lambda i: (0, 0)),              # b2
            ],
            out_specs=pl.BlockSpec((batch_tile, Dp), lambda i: (i, 0)),
        ),
        compiler_params=pltpu.CompilerParams(
            dimension_semantics=("parallel",),     # megacore sharding on v7x
        ),
        cost_estimate=cost,
    )(states, w1r, b1, w2, b2)
    return out[:B]


# ----------------------------------------------------------------------------
# StateFeaturizeWrap: featurizer fused into the Pallas net
# ----------------------------------------------------------------------------
class StateFeaturizeWrapPallas:
    """JAX/Pallas equivalent of StateFeaturizeWrap(net, featurizer) for RNA states.

    `net` is the gflownet 2-layer MLP (Linear -> ReLU -> Linear); the RNA
    featurizer (int sequence -> flattened one-hot) is fused into the kernel,
    so __call__ consumes the raw integer states directly.
    """

    def __init__(self, params, seq_len, *, batch_tile=None):
        w1 = jnp.asarray(params["w1"], jnp.float32)              # (L*4, H)
        b1 = jnp.asarray(params["b1"], jnp.float32).reshape(1, -1)
        w2 = jnp.asarray(params["w2"], jnp.float32)              # (H, D_out)
        b2 = jnp.asarray(params["b2"], jnp.float32).reshape(1, -1)

        d_in, hidden = w1.shape
        assert d_in == seq_len * N_BASES
        self.seq_len = seq_len
        self.d_out = w2.shape[1]
        self.batch_tile = batch_tile

        hp = _round_up(hidden, LANE)          # lane-dense hidden
        dp = _round_up(self.d_out, LANE)      # lane-dense output (unmasked vst)

        # Reorganize W1 so one_hot(x) @ W1 == sum_a (x == a) @ w1r[a]:
        #   w1r[a, l, :] = W1[l*4 + a, :]
        w1r = w1.reshape(seq_len, N_BASES, hidden).transpose(1, 0, 2)
        self.w1r = jnp.pad(w1r, ((0, 0), (0, 0), (0, hp - hidden))).astype(jnp.bfloat16)
        self.b1 = jnp.pad(b1, ((0, 0), (0, hp - hidden)))                         # f32
        self.w2 = jnp.pad(w2, ((0, hp - hidden), (0, dp - self.d_out))).astype(jnp.bfloat16)
        self.b2 = jnp.pad(b2, ((0, 0), (0, dp - self.d_out)))                     # f32

    def __call__(self, batch):
        # "List of States -> tensor": stack the raw int base sequences; one-hot
        # featurization happens inside the kernel (no (B, 4L) float in HBM).
        # (torch.no_grad() is irrelevant here -- pure inference.)
        # Note: out-of-range base ids featurize to all-zeros (like jax.nn.one_hot).
        states = jnp.stack([jnp.asarray(s, jnp.int32) for s in batch], axis=0)
        out = state_mlp_pallas(states, self.w1r, self.b1, self.w2, self.b2,
                               batch_tile=self.batch_tile)
        return out[:, :self.d_out]


# ----------------------------------------------------------------------------
# Reference (pure JAX, same bf16-rounded weights) for verification
# ----------------------------------------------------------------------------
def reference_forward(states, params):
    onehot = jax.nn.one_hot(states, N_BASES, dtype=jnp.float32).reshape(states.shape[0], -1)
    w1 = params["w1"].astype(jnp.bfloat16).astype(jnp.float32)
    w2 = params["w2"].astype(jnp.bfloat16).astype(jnp.float32)
    h = jnp.dot(onehot, w1, precision=lax.Precision.HIGHEST) + params["b1"]
    h = jnp.maximum(h, 0.0).astype(jnp.bfloat16).astype(jnp.float32)
    return jnp.dot(h, w2, precision=lax.Precision.HIGHEST) + params["b2"]


if __name__ == "__main__":
    key = jax.random.PRNGKey(0)

    # Small shapes consistent with the module: batch of 8 RNA states of length 8.
    B, L = 8, 8
    D_in = L * N_BASES   # 32
    H = 32               # hidden width of the wrapped MLP
    D_out = 4            # output dim (e.g. per-action logits)

    k_states, k_w1, k_b1, k_w2, k_b2 = jax.random.split(key, 5)

    # "batch" of States: list of integer base sequences.
    states_int = jax.random.randint(k_states, (B, L), 0, N_BASES, dtype=jnp.int32)
    batch = [states_int[i] for i in range(B)]

    # Deterministic synthetic parameters (module __init__ implies an nn.Linear MLP).
    params = {
        "w1": jax.random.normal(k_w1, (D_in, H), jnp.float32) * 0.1,
        "b1": jax.random.normal(k_b1, (1, H), jnp.float32) * 0.1,
        "w2": jax.random.normal(k_w2, (H, D_out), jnp.float32) * 0.1,
        "b2": jax.random.normal(k_b2, (1, D_out), jnp.float32) * 0.1,
    }

    model = StateFeaturizeWrapPallas(params, seq_len=L)

    out = jax.block_until_ready(model(batch))

    ref = reference_forward(states_int, params)
    assert out.shape == (B, D_out), out.shape
    # bf16 matmul inputs + f32 accumulation (reference uses the same bf16-rounded
    # weights); tolerance covers the residual reassociation / rounding noise.
    assert jnp.allclose(out, ref, atol=1e-3, rtol=1e-3), (
        "mismatch vs reference, max abs err = %g" % float(jnp.max(jnp.abs(out - ref))))

    print("KERNEL_OK")
</pallas_src>

<mosaic_0001>
module attributes {stable_mosaic.version = 11 : i64} {
  func.func @_fused_kernel(%arg0: i32, %arg1: memref<8x8xi32, #tpu.memory_space<vmem>>, %arg2: memref<4x8x128xbf16, #tpu.memory_space<vmem>>, %arg3: memref<1x128xf32, #tpu.memory_space<vmem>>, %arg4: memref<128x128xbf16, #tpu.memory_space<vmem>>, %arg5: memref<1x128xf32, #tpu.memory_space<vmem>>, %arg6: memref<8x128xf32, #tpu.memory_space<vmem>>) attributes {dimension_semantics = [#tpu.dimension_semantics<parallel>], iteration_bounds = array<i64: 1>, scalar_prefetch = 0 : i64, scratch_operands = 0 : i64, tpu.core_type = #tpu.core_type<tc>, window_params = [{transform_indices = @transform_0, window_bounds = array<i64: 8, 8>}, {pipeline_mode = #tpu.pipeline_mode<synchronous>, transform_indices = @transform_1, window_bounds = array<i64: 4, 8, 128>}, {pipeline_mode = #tpu.pipeline_mode<synchronous>, transform_indices = @transform_2, window_bounds = array<i64: 1, 128>}, {pipeline_mode = #tpu.pipeline_mode<synchronous>, transform_indices = @transform_3, window_bounds = array<i64: 128, 128>}, {pipeline_mode = #tpu.pipeline_mode<synchronous>, transform_indices = @transform_4, window_bounds = array<i64: 1, 128>}, {transform_indices = @transform_5, window_bounds = array<i64: 8, 128>}]} {
    %c0 = arith.constant 0 : index
    %c0_0 = arith.constant 0 : index
    %0 = vector.load %arg1[%c0, %c0_0] : memref<8x8xi32, #tpu.memory_space<vmem>>, vector<8x8xi32>
    %cst = arith.constant 0.000000e+00 : f32
    %1 = vector.broadcast %cst : f32 to vector<8x128xf32>
    %c0_i32 = arith.constant 0 : i32
    %2 = vector.broadcast %c0_i32 : i32 to vector<8x8xi32>
    %3 = arith.cmpi eq, %0, %2 : vector<8x8xi32>
    %4 = arith.extui %3 : vector<8x8xi1> to vector<8x8xi32>
    %5 = arith.sitofp %4 : vector<8x8xi32> to vector<8x8xf32>
    %6 = arith.truncf %5 : vector<8x8xf32> to vector<8x8xbf16>
    %c0_1 = arith.constant 0 : index
    %c0_2 = arith.constant 0 : index
    %c0_3 = arith.constant 0 : index
    %7 = vector.load %arg2[%c0_1, %c0_2, %c0_3] : memref<4x8x128xbf16, #tpu.memory_space<vmem>>, vector<1x8x128xbf16>
    %8 = vector.shape_cast %7 : vector<1x8x128xbf16> to vector<8x128xbf16>
    %cst_4 = arith.constant dense<0.000000e+00> : vector<8x128xf32>
    %9 = tpu.matmul %6, %8, %cst_4 {dimension_numbers = #tpu.dot_dimension_numbers<[1], [0], [0], [1], [0, 0, 1, 1], [], []>} : vector<8x8xbf16>, vector<8x128xbf16>, vector<8x128xf32> -> vector<8x128xf32>
    %10 = arith.addf %1, %9 : vector<8x128xf32>
    %c1_i32 = arith.constant 1 : i32
    %11 = vector.broadcast %c1_i32 : i32 to vector<8x8xi32>
    %12 = arith.cmpi eq, %0, %11 : vector<8x8xi32>
    %13 = arith.extui %12 : vector<8x8xi1> to vector<8x8xi32>
    %14 = arith.sitofp %13 : vector<8x8xi32> to vector<8x8xf32>
    %15 = arith.truncf %14 : vector<8x8xf32> to vector<8x8xbf16>
    %c1 = arith.constant 1 : index
    %c0_5 = arith.constant 0 : index
    %c0_6 = arith.constant 0 : index
    %16 = vector.load %arg2[%c1, %c0_5, %c0_6] : memref<4x8x128xbf16, #tpu.memory_space<vmem>>, vector<1x8x128xbf16>
    %17 = vector.shape_cast %16 : vector<1x8x128xbf16> to vector<8x128xbf16>
    %cst_7 = arith.constant dense<0.000000e+00> : vector<8x128xf32>
    %18 = tpu.matmul %15, %17, %cst_7 {dimension_numbers = #tpu.dot_dimension_numbers<[1], [0], [0], [1], [0, 0, 1, 1], [], []>} : vector<8x8xbf16>, vector<8x128xbf16>, vector<8x128xf32> -> vector<8x128xf32>
    %19 = arith.addf %10, %18 : vector<8x128xf32>
    %c2_i32 = arith.constant 2 : i32
    %20 = vector.broadcast %c2_i32 : i32 to vector<8x8xi32>
    %21 = arith.cmpi eq, %0, %20 : vector<8x8xi32>
    %22 = arith.extui %21 : vector<8x8xi1> to vector<8x8xi32>
    %23 = arith.sitofp %22 : vector<8x8xi32> to vector<8x8xf32>
    %24 = arith.truncf %23 : vector<8x8xf32> to vector<8x8xbf16>
    %c2 = arith.constant 2 : index
    %c0_8 = arith.constant 0 : index
    %c0_9 = arith.constant 0 : index
    %25 = vector.load %arg2[%c2, %c0_8, %c0_9] : memref<4x8x128xbf16, #tpu.memory_space<vmem>>, vector<1x8x128xbf16>
    %26 = vector.shape_cast %25 : vector<1x8x128xbf16> to vector<8x128xbf16>
    %cst_10 = arith.constant dense<0.000000e+00> : vector<8x128xf32>
    %27 = tpu.matmul %24, %26, %cst_10 {dimension_numbers = #tpu.dot_dimension_numbers<[1], [0], [0], [1], [0, 0, 1, 1], [], []>} : vector<8x8xbf16>, vector<8x128xbf16>, vector<8x128xf32> -> vector<8x128xf32>
    %28 = arith.addf %19, %27 : vector<8x128xf32>
    %c3_i32 = arith.constant 3 : i32
    %29 = vector.broadcast %c3_i32 : i32 to vector<8x8xi32>
    %30 = arith.cmpi eq, %0, %29 : vector<8x8xi32>
    %31 = arith.extui %30 : vector<8x8xi1> to vector<8x8xi32>
    %32 = arith.sitofp %31 : vector<8x8xi32> to vector<8x8xf32>
    %33 = arith.truncf %32 : vector<8x8xf32> to vector<8x8xbf16>
    %c3 = arith.constant 3 : index
    %c0_11 = arith.constant 0 : index
    %c0_12 = arith.constant 0 : index
    %34 = vector.load %arg2[%c3, %c0_11, %c0_12] : memref<4x8x128xbf16, #tpu.memory_space<vmem>>, vector<1x8x128xbf16>
    %35 = vector.shape_cast %34 : vector<1x8x128xbf16> to vector<8x128xbf16>
    %cst_13 = arith.constant dense<0.000000e+00> : vector<8x128xf32>
    %36 = tpu.matmul %33, %35, %cst_13 {dimension_numbers = #tpu.dot_dimension_numbers<[1], [0], [0], [1], [0, 0, 1, 1], [], []>} : vector<8x8xbf16>, vector<8x128xbf16>, vector<8x128xf32> -> vector<8x128xf32>
    %37 = arith.addf %28, %36 : vector<8x128xf32>
    %c0_14 = arith.constant 0 : index
    %c0_15 = arith.constant 0 : index
    %38 = vector.load %arg3[%c0_14, %c0_15] : memref<1x128xf32, #tpu.memory_space<vmem>>, vector<1x128xf32>
    %39 = vector.broadcast %38 : vector<1x128xf32> to vector<8x128xf32>
    %40 = arith.addf %37, %39 : vector<8x128xf32>
    %cst_16 = arith.constant 0.000000e+00 : f32
    %41 = vector.broadcast %cst_16 : f32 to vector<8x128xf32>
    %42 = arith.maximumf %40, %41 : vector<8x128xf32>
    %43 = arith.truncf %42 : vector<8x128xf32> to vector<8x128xbf16>
    %c0_17 = arith.constant 0 : index
    %c0_18 = arith.constant 0 : index
    %44 = vector.load %arg4[%c0_17, %c0_18] : memref<128x128xbf16, #tpu.memory_space<vmem>>, vector<128x128xbf16>
    %cst_19 = arith.constant dense<0.000000e+00> : vector<8x128xf32>
    %45 = tpu.matmul %43, %44, %cst_19 {dimension_numbers = #tpu.dot_dimension_numbers<[1], [0], [0], [1], [0, 0, 1, 1], [], []>} : vector<8x128xbf16>, vector<128x128xbf16>, vector<8x128xf32> -> vector<8x128xf32>
    %c0_20 = arith.constant 0 : index
    %c0_21 = arith.constant 0 : index
    %46 = vector.load %arg5[%c0_20, %c0_21] : memref<1x128xf32, #tpu.memory_space<vmem>>, vector<1x128xf32>
    %47 = vector.broadcast %46 : vector<1x128xf32> to vector<8x128xf32>
    %48 = arith.addf %45, %47 : vector<8x128xf32>
    %c0_22 = arith.constant 0 : index
    %c0_23 = arith.constant 0 : index
    %49 = vector.load %arg6[%c0_22, %c0_23] : memref<8x128xf32, #tpu.memory_space<vmem>>, vector<8x128xf32>
    tpu.vector_store %arg6[%c0_22, %c0_23], %48 {strides = array<i32>} : memref<8x128xf32, #tpu.memory_space<vmem>>, vector<8x128xf32>,
    return
  }
  func.func @transform_0(%arg0: i32) -> (i32, i32) {
    %c0_i32 = arith.constant 0 : i32
    %c0_i32_0 = arith.constant 0 : i32
    return %arg0, %c0_i32 : i32, i32
  }
  func.func @transform_1(%arg0: i32) -> (i32, i32, i32) {
    %c0_i32 = arith.constant 0 : i32
    %c0_i32_0 = arith.constant 0 : i32
    %c0_i32_1 = arith.constant 0 : i32
    %c0_i32_2 = arith.constant 0 : i32
    return %c0_i32, %c0_i32_0, %c0_i32_1 : i32, i32, i32
  }
  func.func @transform_2(%arg0: i32) -> (i32, i32) {
    %c0_i32 = arith.constant 0 : i32
    %c0_i32_0 = arith.constant 0 : i32
    %c0_i32_1 = arith.constant 0 : i32
    return %c0_i32, %c0_i32_0 : i32, i32
  }
  func.func @transform_3(%arg0: i32) -> (i32, i32) {
    %c0_i32 = arith.constant 0 : i32
    %c0_i32_0 = arith.constant 0 : i32
    %c0_i32_1 = arith.constant 0 : i32
    return %c0_i32, %c0_i32_0 : i32, i32
  }
  func.func @transform_4(%arg0: i32) -> (i32, i32) {
    %c0_i32 = arith.constant 0 : i32
    %c0_i32_0 = arith.constant 0 : i32
    %c0_i32_1 = arith.constant 0 : i32
    return %c0_i32, %c0_i32_0 : i32, i32
  }
  func.func @transform_5(%arg0: i32) -> (i32, i32) {
    %c0_i32 = arith.constant 0 : i32
    %c0_i32_0 = arith.constant 0 : i32
    return %arg0, %c0_i32 : i32, i32
  }
}

</mosaic_0001>

<bundles_post_ra>
// kernel: tpu_custom_call.1
= control target key start
LH: loop header
LB: loop body
LE: loop exit
PB: predicated region body
PF: predicated region fallthrough
CT: control target
= control target key end

     0   :  { %10 = vsyncpa [#allocation3], 0  ;;  %s711_s0 = inlined_call_operand.hbm [shape: s32[8,8], index: 0, kind: input, shape index: {}]   ;;  %s712_s1 = inlined_call_operand.hbm [shape: bf16[4,8,128], index: 1, kind: input, shape index: {}]   ;;  %s713_s2 = inlined_call_operand.vmem [shape: f32[1,128], index: 2, kind: input, shape index: {}]   ;;  %s714_s3 = inlined_call_operand.hbm [shape: bf16[128,128], index: 3, kind: input, shape index: {}]   ;;  %s715_s4 = inlined_call_operand.vmem [shape: f32[1,128], index: 4, kind: input, shape index: {}]   ;;  %s716_s5 = inlined_call_operand.hbm [shape: f32[8,128], index: 5, kind: output, shape index: {}]  }
   0x1   :  { %11 = vsyncpa [#allocation6], 0 }
   0x2   :  { %12 = vsyncpa [#allocation4], 0  ;;  %s600_s18 = smov [#allocation5]   ;;  %s506_s22 = scalar_lea.hbm %s712_s1, 256 }
   0x3   :  { %s28_s19 = sshll.u32 %s600_s18, 4  ;;  %p507_p0 = scmp.ne.s32.totalorder %s712_s1, %s506_s22  ;;  %s29_s19 = int_to_ptr.vmem [resolvable:$true] %s28_s19 }
   0x4   :  { %p510_p1 = scmp.lt.u32.totalorder %s506_s22, %s712_s1 }
   0x6   :  { %p512_p2 = pnand %p510_p1, %p507_p0 }
   0x8   :  { %515 = shalt.err (!%p512_p2)
}
   0x9   :  { %s516_s27 = scalar_lea.vmem %s29_s19, 256  ;;  %p521_p4 = scmp.lt.s32.totalorder %s29_s19, %s29_s19 }
   0xa   :  { %p517_p3 = scmp.ne.s32.totalorder %s29_s19, %s516_s27  ;;  %p522_p5 = scmp.lt.s32.totalorder %s516_s27, %s516_s27 }
   0xc   :  { %p523_p6 = por %p522_p5, %p521_p4 }
   0xe   :  { %p524_p7 = pnand %p523_p6, %p517_p3 }
  0x10   :  { %527 = shalt.err (!%p524_p7)
}
  0x11   :  { %s601_s28 = smov 64   ;;  %s602_s29 = smov 4  }
  0x12   :  { %34 = dma.hbm_to_vmem [thread:$0]  %s712_s1, 256, %s29_s19, [#allocation6], %s601_s28, %s601_s28, %s602_s29  }
  0x13   :  { %s603_s7 = smov [#allocation2]   ;;  %s604_s9 = smov [#allocation7]  }
  0x14   :  { %s19_s8 = sshll.u32 %s603_s7, 4  ;;  %s42_s10 = sshll.u32 %s604_s9, 4  ;;  %s20_s8 = int_to_ptr.vmem [resolvable:$true] %s19_s8  ;;  %s43_s10 = int_to_ptr.vmem [resolvable:$true] %s42_s10 }
  0x15   :  { %s528_s13 = scalar_lea.hbm %s711_s0, 128 }
  0x16   :  { %p529_p8 = scmp.ne.s32.totalorder %s711_s0, %s528_s13  ;;  %p532_p9 = scmp.lt.u32.totalorder %s528_s13, %s711_s0 }
  0x18   :  { %p534_p10 = pnand %p532_p9, %p529_p8 }
  0x1a   :  { %537 = shalt.err (!%p534_p10)
}
  0x1b   :  { %s538_s1 = scalar_lea.vmem %s20_s8, 128  ;;  %p543_p12 = scmp.lt.s32.totalorder %s20_s8, %s20_s8 }
  0x1c   :  { %p539_p11 = scmp.ne.s32.totalorder %s20_s8, %s538_s1  ;;  %p544_p13 = scmp.lt.s32.totalorder %s538_s1, %s538_s1 }
  0x1e   :  { %p545_p0 = por %p544_p13, %p543_p12 }
  0x20   :  { %p546_p1 = pnand %p545_p0, %p539_p11 }
  0x22   :  { %549 = shalt.err (!%p546_p1)
}
  0x23   :  { %22 = dma.hbm_to_vmem [thread:$0]  %s711_s0, 128, %s20_s8, [#allocation3]  }
  0x24   :  { %s550_s22 = scalar_lea.hbm %s714_s3, 1024 }
  0x25   :  { %p551_p2 = scmp.ne.s32.totalorder %s714_s3, %s550_s22  ;;  %p554_p3 = scmp.lt.u32.totalorder %s550_s22, %s714_s3 }
  0x27   :  { %p556_p4 = pnand %p554_p3, %p551_p2 }
  0x29   :  { %559 = shalt.err (!%p556_p4)
}
  0x2a   :  { %s560_s27 = scalar_lea.vmem %s43_s10, 1024  ;;  %p565_p6 = scmp.lt.s32.totalorder %s43_s10, %s43_s10 }
  0x2b   :  { %p561_p5 = scmp.ne.s32.totalorder %s43_s10, %s560_s27  ;;  %p566_p7 = scmp.lt.s32.totalorder %s560_s27, %s560_s27 }
  0x2d   :  { %p567_p8 = por %p566_p7, %p565_p6 }
  0x2f   :  { %p568_p9 = pnand %p567_p8, %p561_p5 }
  0x31   :  { %571 = shalt.err (!%p568_p9)
}
  0x32   :  { %48 = dma.hbm_to_vmem [thread:$0]  %s714_s3, 1024, %s43_s10, [#allocation6], %s601_s28, %s601_s28, %s602_s29  }
  0x33   :  { %594 = dma.done.wait [#allocation3], 128  }
  0x34   :  { %595 = vsyncadd [#allocation3], 4294967168 }
  0x35   :  { %596 = dma.done.wait [#allocation6], 1280  }
  0x36   :  { %597 = vsyncadd [#allocation6], 4294966016  ;;  %v605_v0 = vmov 0.0   ;;  %vm606_vm0 = vmmov 0   ;;  %vm77_vm1 = vcmask 1043456   ;;  %v61_v2 = vld [vmem:[#allocation2] sm:$0xff] }
  0x37   :  { %446 = vmatprep.subr.bf16.mxu1 %v605_v0  ;;  %448 = vmatprep.mubr.msk.bf16.mxu1 %vm606_vm0, %v605_v0  ;;  %v72_v1 = vld [vmem:[#allocation5 + $0x4] sm:$0xf]  ;;  %v66_v3 = vld [vmem:[#allocation5] sm:$0xf]  ;;  %vm67_vm2 = vcmp.eq.s32.totalorder %v61_v2, 1  ;;  %vm73_vm3 = vcmask 64512  }
  0x38   :  { %470 = vmatprep.subr.bf16.mxu0 %v605_v0  ;;  %486 = vmatprep.mubr.msk.bf16.mxu0 %vm606_vm0, %v605_v0  ;;  %v79_v4 = vsel %vm77_vm1, %v72_v1, 0  ;;  %v412_v5 = vsel %vm67_vm2, 1.0, %v605_v0  ;;  %vm62_vm4 = vcmp.eq.s32.totalorder %v61_v2, 0  ;;  %v125_v7 = vsel %vm77_vm1, %v66_v3, 0  ;;  %v172_v9 = vld [vmem:[#allocation5 + $0x8] sm:$0xf] }
  0x39   :  { %447 = vmatpush3.bf16.msra.mxu1 %v79_v4  ;;  %v70_v6 = vpack.c.bf16 %v412_v5, %v412_v5  ;;  %v411_v8 = vsel %vm62_vm4, 1.0, %v605_v0  ;;  %v177_v11 = vsel %vm77_vm1, %v172_v9, 0  ;;  %vm167_vm5 = vcmp.eq.s32.totalorder %v61_v2, 2  ;;  %v225_v13 = vld [vmem:[#allocation5 + $0xc] sm:$0xf]  ;;  %v498_v18 = vld [vmem:[#allocation7] sm:$0xff]  }
  0x3a   :  { %452 = vmatprep.subr.bf16.mxu1 %v605_v0  ;;  %v65_v10 = vpack.c.bf16 %v411_v8, %v411_v8  ;;  %v415_v12 = vsel %vm167_vm5, 1.0, %v605_v0  ;;  %v230_v15 = vsel %vm77_vm1, %v225_v13, 0  ;;  %vm220_vm6 = vcmp.eq.s32.totalorder %v61_v2, 3  ;;  %471 = vmatpush3.bf16.msra.mxu0 %v498_v18  ;;  %v499_v19 = vld [vmem:[#allocation7 + $0x8] sm:$0xff]   ;;  %v500_v20 = vld [vmem:[#allocation7 + $0x10] sm:$0xff]   ;;  %v501_v21 = vld [vmem:[#allocation7 + $0x18] sm:$0xff]  }
  0x3b   :  { %v170_v14 = vpack.c.bf16 %v415_v12, %v415_v12  ;;  %v417_v16 = vsel %vm220_vm6, 1.0, %v605_v0  ;;  %472 = vmatprep.subr.bf16.mxu0 %v605_v0  ;;  %v502_v22 = vld [vmem:[#allocation7 + $0x20] sm:$0xff]   ;;  %v503_v23 = vld [vmem:[#allocation7 + $0x28] sm:$0xff]   ;;  %v504_v24 = vld [vmem:[#allocation7 + $0x30] sm:$0xff]   ;;  %s607_s7 = smov [#allocation8]  }
  0x3c   :  { %449 = vmatmul.mubr.msk.bf16.vlgmr.msra.gmra.mrb[0].mxu1 %vm73_vm3, %v70_v6  ;;  %v223_v17 = vpack.c.bf16 %v417_v16, %v417_v16  ;;  %v505_v25 = vld [vmem:[#allocation7 + $0x38] sm:$0xff]   ;;  %v419_v41 = vld [vmem:[%s713_s2] ss:$0 sm:$0xff]  ;;  %s401_s8 = sshll.u32 %s607_s7, 4  ;;  %s402_s8 = int_to_ptr.vmem [resolvable:$true] %s401_s8 }
  0x3d   :  { %453 = vmatpush3.bf16.msra.mxu1 %v125_v7  ;;  %454 = vmatprep.mubr.msk.bf16.mxu1 %vm606_vm0, %v605_v0  ;;  %v420_v49 = vld [vmem:[%s715_s4] ss:$0 sm:$0xff]  ;;  %s572_s2 = scalar_lea.vmem %s402_s8, 128  ;;  %p577_p11 = scmp.lt.s32.totalorder %s402_s8, %s402_s8 }
  0x3e   :  { %458 = vmatprep.subr.bf16.mxu1 %v605_v0  ;;  %473 = vmatpush3.bf16.msra.mxu0 %v499_v19  ;;  %p573_p10 = scmp.ne.s32.totalorder %s402_s8, %s572_s2  ;;  %p578_p12 = scmp.lt.s32.totalorder %s572_s2, %s572_s2 }
  0x3f   :  { %474 = vmatprep.subr.bf16.mxu0 %v605_v0 }
  0x40   :  { %p579_p13 = por %p578_p12, %p577_p11 }
  0x42   :  { %475 = vmatpush3.bf16.msra.mxu0 %v500_v20  ;;  %p580_p0 = pnand %p579_p13, %p573_p10 }
  0x43   :  { %476 = vmatprep.subr.bf16.mxu0 %v605_v0 }
  0x44   :  { %455 = vmatmul.mubr.msk.bf16.vlgmr.msra.gmra.mrb[4].mxu1 %vm73_vm3, %v65_v10 }
  0x45   :  { %459 = vmatpush3.bf16.msra.mxu1 %v177_v11  ;;  %460 = vmatprep.mubr.msk.bf16.mxu1 %vm606_vm0, %v605_v0 }
  0x46   :  { %464 = vmatprep.subr.bf16.mxu1 %v605_v0  ;;  %477 = vmatpush3.bf16.msra.mxu0 %v501_v21 }
  0x47   :  { %478 = vmatprep.subr.bf16.mxu0 %v605_v0 }
  0x4a   :  { %479 = vmatpush3.bf16.msra.mxu0 %v502_v22 }
  0x4b   :  { %480 = vmatprep.subr.bf16.mxu0 %v605_v0 }
  0x4c   :  { %461 = vmatmul.mubr.msk.bf16.vlgmr.msra.gmra.mrb[8].mxu1 %vm73_vm3, %v170_v14 }
  0x4d   :  { %465 = vmatpush3.bf16.msra.mxu1 %v230_v15  ;;  %466 = vmatprep.mubr.msk.bf16.mxu1 %vm606_vm0, %v605_v0 }
  0x4e   :  { %481 = vmatpush3.bf16.msra.mxu0 %v503_v23 }
  0x4f   :  { %482 = vmatprep.subr.bf16.mxu0 %v605_v0 }
  0x52   :  { %483 = vmatpush3.bf16.msra.mxu0 %v504_v24 }
  0x53   :  { %484 = vmatprep.subr.bf16.mxu0 %v605_v0 }
  0x54   :  { %467 = vmatmul.mubr.msk.bf16.vlgmr.msra.gmra.mrb[12].mxu1 %vm73_vm3, %v223_v17 }
  0x56   :  { %485 = vmatpush3.bf16.msra.mxu0 %v505_v25 }
 0x10f   :  { %v115_v26 = vpop.f32.mrb[0].mxu1 }
 0x110   :  { %v450_v27 = vpop.f32.mrb[1].mxu1 }
 0x111   :  { %v118_v28 = vpop.f32.mrb[2].mxu1 }
 0x112   :  { %v451_v29 = vpop.f32.mrb[3].mxu1 }
 0x117   :  { %v161_v30 = vpop.f32.mrb[4].mxu1 }
 0x118   :  { %v162_v31 = vadd.f32 %v161_v30, %v115_v26  ;;  %v456_v32 = vpop.f32.mrb[5].mxu1 }
 0x119   :  { %v164_v33 = vpop.f32.mrb[6].mxu1 }
 0x11a   :  { %v457_v34 = vpop.f32.mrb[7].mxu1 }
 0x11f   :  { %v213_v35 = vpop.f32.mrb[8].mxu1 }
 0x120   :  { %v219_v36 = vadd.f32 %v213_v35, %v162_v31  ;;  %v462_v37 = vpop.f32.mrb[9].mxu1 }
 0x121   :  { %v216_v38 = vpop.f32.mrb[10].mxu1 }
 0x122   :  { %v463_v39 = vpop.f32.mrb[11].mxu1 }
 0x127   :  { %v266_v40 = vpop.f32.mrb[12].mxu1 }
 0x128   :  { %v272_v42 = vadd.f32 %v266_v40, %v219_v36  ;;  %v468_v43 = vpop.f32.mrb[13].mxu1 }
 0x129   :  { %v269_v44 = vpop.f32.mrb[14].mxu1 }
 0x12a   :  { %v280_v45 = vadd.f32 %v419_v41, %v272_v42  ;;  %v469_v46 = vpop.f32.mrb[15].mxu1 }
 0x12c   :  { %v281_v47 = vmax.f32 %v280_v45, 0.0 }
 0x12e   :  { %v282_v48 = vpack.c.bf16 %v281_v47, %v281_v47 }
 0x130   :  { %487 = vmatmul.mubr.bf16.vlgmr.msra.gmra.mrb[0].mxu0 %v282_v48 }
 0x203   :  { %v388_v50 = vpop.f32.mrb[0].mxu0 }
 0x204   :  { %v389_v51 = vadd.f32 %v420_v49, %v388_v50  ;;  %v488_v52 = vpop.f32.mrb[1].mxu0 }
 0x205   :  { %v391_v53 = vpop.f32.mrb[2].mxu0 }
 0x206   :  { %394 = vst [vmem:[#allocation8] sm:$0xff] %v389_v51  ;;  %v489_v54 = vpop.f32.mrb[3].mxu0 }
 0x207   :  { %583 = shalt.err (!%p580_p0)
}
 0x208   :  { %s584_s4 = scalar_lea.hbm %s716_s5, 128 }
 0x209   :  { %p585_p1 = scmp.ne.s32.totalorder %s716_s5, %s584_s4  ;;  %p588_p2 = scmp.lt.u32.totalorder %s584_s4, %s716_s5 }
 0x20b   :  { %p590_p3 = pnand %p588_p2, %p585_p1 }
 0x20d   :  { %593 = shalt.err (!%p590_p3)
}
 0x20e   :  { %404 = dma.vmem_to_hbm [thread:$0]  %s402_s8, 128, %s716_s5, [#allocation4]  }
 0x20f   :  { %598 = dma.done.wait [#allocation4], 128  }
 0x210   :  { %599 = vsyncadd [#allocation4], 4294967168 }
 0x211   :  { %408 = vsyncpa [#allocation3], 1 }
 0x212   :  { %409 = vsyncpa [#allocation6], 1 }
 0x213   :  { %410 = vsyncpa [#allocation4], 1 }

</bundles_post_ra>
